<compile_context>
chip_gen: v7x
topology: tpu7x:2x2x1
jax: 0.10.0
libtpu: 0.0.40
codegen_flags: <defaults>
</compile_context>

<pallas_src>
import functools
import math

import jax
import jax.numpy as jnp
from jax import lax
from jax.experimental import pallas as pl
from jax.experimental.pallas import tpu as pltpu

F32 = jnp.float32
# Matmul operands are bf16 (f32 accumulation on the MXU); weights stored bf16.
MXU_DTYPE = jnp.bfloat16


def _vmem_limit_bytes():
    # Derive the scoped-VMEM cap from the actual chip (v7x has only 64 MiB per
    # TensorCore); fall back to a value safe on every generation.
    try:
        cap = int(pltpu.get_tpu_info().vmem_capacity_bytes)
        return max(32 * 1024 * 1024, min(64 * 1024 * 1024, (cap * 3) // 4))
    except Exception:
        return 48 * 1024 * 1024


def _use_bf16_exp():
    # bf16 exp (EUP) only helps on v6e/v7x; v5e/v4 have no bf16 EUP/VPU.
    try:
        kind = jax.devices()[0].device_kind.lower()
        return any(tag in kind for tag in ("v6", "v7", "7x"))
    except Exception:
        return False


VMEM_LIMIT_BYTES = _vmem_limit_bytes()
BF16_EXP = _use_bf16_exp()


def _cparams(dims):
    return pltpu.CompilerParams(dimension_semantics=dims,
                                vmem_limit_bytes=VMEM_LIMIT_BYTES)


def _sigmoid(x):
    return 1.0 / (1.0 + jnp.exp(-x))


def _softplus(x):
    return jnp.where(x > 20.0, x, jnp.log(1.0 + jnp.exp(jnp.minimum(x, 20.0))))


def _pick_time_chunk(t):
    for c in (256, 128, 64, 32, 16, 8):
        if t % c == 0:
            return c
    return t


# ----------------------------- tiled linear -----------------------------

def _linear_kernel(x_ref, w_ref, o_ref, *, act):
    y = jnp.dot(x_ref[...].astype(MXU_DTYPE), w_ref[...].astype(MXU_DTYPE),
                preferred_element_type=F32)
    if act == "relu":
        y = jnp.maximum(y, 0.0)
    o_ref[...] = y


def _linear_bias_kernel(x_ref, w_ref, b_ref, o_ref, *, act):
    y = jnp.dot(x_ref[...].astype(MXU_DTYPE), w_ref[...].astype(MXU_DTYPE),
                preferred_element_type=F32) + b_ref[...]
    if act == "relu":
        y = jnp.maximum(y, 0.0)
    o_ref[...] = y


def linear(x, w, b=None, act="none", tm_max=256, tn_max=512):
    """(M,K)@(K,N) [+ bias] [+ relu], tiled over (M, N).

    The grid axis whose operand is cheaper to re-stream is placed outermost so
    the more expensive operand is DMA'd from HBM only once (weight re-fetch
    review item)."""
    m, k = x.shape
    n = w.shape[1]
    tm = m if m <= tm_max else tm_max
    tn = n if n <= tn_max else tn_max
    ni, nj = pl.cdiv(m, tm), pl.cdiv(n, tn)
    # i-outer/j-inner re-streams W ni times; j-outer/i-inner re-streams X nj times.
    j_outer = nj * m * k < ni * k * n
    if j_outer:
        grid = (nj, ni)
        xmap = lambda j, i: (i, 0)
        wmap = lambda j, i: (0, j)
        omap = lambda j, i: (i, j)
    else:
        grid = (ni, nj)
        xmap = lambda i, j: (i, 0)
        wmap = lambda i, j: (0, j)
        omap = lambda i, j: (i, j)
    x_spec = pl.BlockSpec((tm, k), xmap)
    w_spec = pl.BlockSpec((k, tn), wmap)
    o_spec = pl.BlockSpec((tm, tn), omap)
    out_shape = jax.ShapeDtypeStruct((m, n), F32)
    if b is None:
        return pl.pallas_call(
            functools.partial(_linear_kernel, act=act),
            out_shape=out_shape, grid=grid,
            in_specs=[x_spec, w_spec], out_specs=o_spec,
            compiler_params=_cparams(("parallel", "parallel")),
        )(x, w)
    b2 = b.reshape(1, n)
    b_spec = pl.BlockSpec((1, tn), wmap)
    return pl.pallas_call(
        functools.partial(_linear_bias_kernel, act=act),
        out_shape=out_shape, grid=grid,
        in_specs=[x_spec, w_spec, b_spec], out_specs=o_spec,
        compiler_params=_cparams(("parallel", "parallel")),
    )(x, w, b2)


# -------------------- Conv3 + BN(eval) + ReLU + skip (fused) --------------------

def _conv3_kernel(x_ref, w_ref, scale_ref, bias_ref, *rest, fuse_skip):
    if fuse_skip:
        wskip_ref, o_ref, pad_scr = rest
    else:
        o_ref, pad_scr = rest
    t, cout = o_ref.shape
    cin = x_ref.shape[1]
    x = x_ref[...]
    # zero-pad (k=3, padding=1) in VMEM scratch instead of an HBM xpad tensor
    pad_scr[pl.ds(1, t), :] = x
    zrow = jnp.zeros((1, cin), F32)
    pad_scr[0:1, :] = zrow
    pad_scr[pl.ds(t + 1, 1), :] = zrow
    acc = jnp.zeros((t, cout), F32)
    for k in range(3):
        acc = acc + jnp.dot(pad_scr[pl.ds(k, t), :].astype(MXU_DTYPE),
                            w_ref[k].astype(MXU_DTYPE),
                            preferred_element_type=F32)
    y = jnp.maximum(acc * scale_ref[...] + bias_ref[...], 0.0)   # BN(eval)+ReLU
    if fuse_skip:
        skip = jnp.dot(x.astype(MXU_DTYPE), wskip_ref[...].astype(MXU_DTYPE),
                       preferred_element_type=F32)
    else:
        skip = x
    o_ref[...] = y + skip


def cnn_encoder_layer(x, p):
    """(MM)CNNEncoderLayer: Conv1d(k=3,pad=1)+BN+ReLU + (fused) skip."""
    b, t, cin = x.shape
    w = p["w_conv3"]
    cout = w.shape[2]
    fuse_skip = p["w_skip"] is not None
    in_specs = [pl.BlockSpec((None, t, cin), lambda i: (i, 0, 0)),
                pl.BlockSpec((3, cin, cout), lambda i: (0, 0, 0)),
                pl.BlockSpec((1, cout), lambda i: (0, 0)),
                pl.BlockSpec((1, cout), lambda i: (0, 0))]
    args = [x, w, p["bn_scale"], p["bn_bias"]]
    if fuse_skip:
        in_specs.append(pl.BlockSpec((cin, cout), lambda i: (0, 0)))
        args.append(p["w_skip"])
    return pl.pallas_call(
        functools.partial(_conv3_kernel, fuse_skip=fuse_skip),
        out_shape=jax.ShapeDtypeStruct((b, t, cout), F32),
        grid=(b,),
        in_specs=in_specs,
        out_specs=pl.BlockSpec((None, t, cout), lambda i: (i, 0, 0)),
        scratch_shapes=[pltpu.VMEM((t + 8, cin), F32)],
        compiler_params=_cparams(("parallel",)),
    )(*args)


# ------------ fused out-projection + LayerNorm + residual (per Mamba layer) ------------

def _outln_kernel(y_ref, w_ref, x_ref, g_ref, b_ref, o_ref):
    h = jnp.dot(y_ref[...].astype(MXU_DTYPE), w_ref[...].astype(MXU_DTYPE),
                preferred_element_type=F32)
    mu = jnp.mean(h, axis=-1, keepdims=True)
    var = jnp.mean(jnp.square(h - mu), axis=-1, keepdims=True)
    hhat = (h - mu) * lax.rsqrt(var + 1e-6)
    o_ref[...] = x_ref[...] + hhat * g_ref[...] + b_ref[...]


def outproj_ln_residual(y, w, x, gamma, beta, tm_max=256):
    """out = x + LayerNorm(y @ w_out), eps=1e-6; one kernel, no intermediate HBM pass."""
    b, t, din = y.shape
    d = x.shape[-1]
    bt = b * t
    tm = bt if bt <= tm_max else tm_max
    out = pl.pallas_call(
        _outln_kernel,
        out_shape=jax.ShapeDtypeStruct((bt, d), F32),
        grid=(pl.cdiv(bt, tm),),
        in_specs=[pl.BlockSpec((tm, din), lambda i: (i, 0)),
                  pl.BlockSpec((din, d), lambda i: (0, 0)),
                  pl.BlockSpec((tm, d), lambda i: (i, 0)),
                  pl.BlockSpec((1, d), lambda i: (0, 0)),
                  pl.BlockSpec((1, d), lambda i: (0, 0))],
        out_specs=pl.BlockSpec((tm, d), lambda i: (i, 0)),
        compiler_params=_cparams(("parallel",)),
    )(y.reshape(bt, din), w, x.reshape(bt, d), gamma, beta)
    return out.reshape(b, t, d)


# ------------- depthwise causal conv (k=4) + SiLU, channel-blocked & chunked -------------

def _dwconv_silu_kernel(x_ref, w_ref, b_ref, o_ref, pad_scr, carry_scr, *, reverse):
    tc, dblk = o_ref.shape
    c = pl.program_id(2)

    @pl.when(c == 0)
    def _():
        carry_scr[...] = jnp.zeros_like(carry_scr)

    x = x_ref[...]
    if not reverse:
        # causal:       out[t] = sum_k w[k] * x[t - 3 + k]
        pad_scr[0:3, :] = carry_scr[0:3, :]
        pad_scr[pl.ds(3, tc), :] = x
        carry_scr[0:3, :] = x_ref[pl.ds(tc - 3, 3), :]
        offs = (0, 1, 2, 3)
    else:
        # anti-causal (== causal conv of the flipped sequence; no flips needed)
        pad_scr[pl.ds(0, tc), :] = x
        pad_scr[pl.ds(tc, 3), :] = carry_scr[0:3, :]
        carry_scr[0:3, :] = x_ref[0:3, :]
        offs = (3, 2, 1, 0)

    acc = jnp.zeros((tc, dblk), F32) + b_ref[...]
    for k in range(4):
        acc = acc + pad_scr[pl.ds(offs[k], tc), :] * w_ref[k:k + 1, :]
    o_ref[...] = acc * _sigmoid(acc)                       # SiLU


def dwconv_silu(xz, w, bias, *, d_inner, reverse, tc, dblk):
    """Reads the x-half of the packed xz tensor directly (channel-block columns)."""
    bsz, t, _ = xz.shape
    nc = t // tc
    nd = d_inner // dblk
    if reverse:
        rt = lambda c: nc - 1 - c
    else:
        rt = lambda c: c
    mx = lambda dj, i, c: (i, rt(c), dj)
    mw = lambda dj, i, c: (0, dj)
    return pl.pallas_call(
        functools.partial(_dwconv_silu_kernel, reverse=reverse),
        out_shape=jax.ShapeDtypeStruct((bsz, t, d_inner), F32),
        grid=(nd, bsz, nc),
        in_specs=[pl.BlockSpec((None, tc, dblk), mx),
                  pl.BlockSpec((4, dblk), mw),
                  pl.BlockSpec((1, dblk), mw)],
        out_specs=pl.BlockSpec((None, tc, dblk), mx),
        scratch_shapes=[pltpu.VMEM((tc + 8, dblk), F32),
                        pltpu.VMEM((8, dblk), F32)],
        compiler_params=_cparams(("parallel", "parallel", "arbitrary")),
    )(xz, w, bias)


# ---------------- fused dt_proj + softplus + selective scan + gate ----------------

def _scan_kernel(u_ref, z_ref, xdb_ref, wdt_ref, bdt_ref, a_ref, d_ref, *rest,
                 reverse, accumulate, r, s, g_steps, bf16_exp):
    if accumulate:
        acc_ref, o_ref, dt_scr, du_scr, hstack_scr, h_scr = rest
    else:
        acc_ref = None
        o_ref, dt_scr, du_scr, hstack_scr, h_scr = rest
    tc, dblk = u_ref.shape
    c = pl.program_id(2)

    @pl.when(c == 0)
    def _():
        h_scr[...] = jnp.zeros_like(h_scr)

    # --- hoisted chunk-wide math: dt projection (kept f32 - it feeds exp(dt*A)
    # on the recurrence), softplus, dt*u.  w_dtproj is zero-padded to 128 rows
    # so the lane-dense xdb tile is used directly (no in-kernel column slice).
    dt = jnp.dot(xdb_ref[...], wdt_ref[...],
                 preferred_element_type=F32) + bdt_ref[...]
    dt = _softplus(dt)
    dt_scr[...] = dt
    du_scr[...] = dt * u_ref[...]

    a = a_ref[...]                                              # (S, dblk)
    n_groups = tc // g_steps

    def group_body(gi, h):
        g = (n_groups - 1 - gi) if reverse else gi
        base = pl.multiple_of(g * g_steps, g_steps)
        dtg = dt_scr[pl.ds(base, g_steps), :]                   # (G, dblk) aligned
        dug = du_scr[pl.ds(base, g_steps), :]                   # (G, dblk) aligned
        gxdb = xdb_ref[pl.ds(base, g_steps), :]                 # (G, 128)
        bgt = jnp.transpose(gxdb[:, r:r + s])                   # (S, G)
        order = range(g_steps - 1, -1, -1) if reverse else range(g_steps)
        for k in order:
            dt_row = dtg[k:k + 1, :]                            # (1, dblk)
            du_row = dug[k:k + 1, :]                            # (1, dblk)
            b_col = bgt[:, k:k + 1]                             # (S, 1)
            da_arg = dt_row * a                                 # (S, dblk)
            # exp is independent of h; bf16 on v6e/v7x doubles EUP throughput.
            if bf16_exp:
                da = jnp.exp(da_arg.astype(jnp.bfloat16)).astype(F32)
            else:
                da = jnp.exp(da_arg)
            h = da * h + b_col * du_row                         # (S, dblk)
            hstack_scr[s * k:s * k + s, :] = h                  # aligned, off chain
        # C-contraction for the whole group: one block-diagonal MXU matmul,
        # replaces G degenerate (1,S) dots (per-step weight re-push) and G
        # masked 1-row y stores.
        cg = gxdb[:, r + s:r + 2 * s]                           # (G, S)
        lane = lax.broadcasted_iota(jnp.int32, (g_steps, g_steps * s), 1)
        row = lax.broadcasted_iota(jnp.int32, (g_steps, g_steps * s), 0)
        cbd = jnp.where(lane // s == row,
                        jnp.concatenate([cg] * g_steps, axis=1), 0.0)
        yg = jnp.dot(cbd, hstack_scr[...], preferred_element_type=F32)
        ug = u_ref[pl.ds(base, g_steps), :]
        zg = z_ref[pl.ds(base, g_steps), :]
        yg = yg + d_ref[...] * ug
        yg = yg * (zg * _sigmoid(zg))                           # gate: y * SiLU(z)
        if accumulate:
            yg = yg + acc_ref[pl.ds(base, g_steps), :]          # fwd+bwd fused add
        o_ref[pl.ds(base, g_steps), :] = yg                     # aligned (G, dblk) store
        return h

    h_last = lax.fori_loop(0, n_groups, group_body, h_scr[...])
    h_scr[...] = h_last


def selective_scan(xc, xz, xdb, dp, acc, *, reverse, tc, dblk):
    bsz, t, din = xc.shape
    s = dp["A"].shape[0]
    r = dp["dt_rank"]
    nc = t // tc
    nd = din // dblk
    zoff = din // dblk                     # z is the 2nd half of the packed xz
    g_steps = 8 if tc % 8 == 0 else 1
    if reverse:
        rt = lambda c: nc - 1 - c
    else:
        rt = lambda c: c
    m_u = lambda dj, i, c: (i, rt(c), dj)
    m_z = lambda dj, i, c: (i, rt(c), zoff + dj)
    m_xdb = lambda dj, i, c: (i, rt(c), 0)
    m_w = lambda dj, i, c: (0, dj)
    in_specs = [pl.BlockSpec((None, tc, dblk), m_u),        # u = SiLU(conv(x))
                pl.BlockSpec((None, tc, dblk), m_z),        # z gate
                pl.BlockSpec((None, tc, 128), m_xdb),       # x_proj out: dt|B|C|0
                pl.BlockSpec((128, dblk), m_w),             # dt_proj weight (padded)
                pl.BlockSpec((1, dblk), m_w),               # dt_proj bias
                pl.BlockSpec((s, dblk), m_w),               # A
                pl.BlockSpec((1, dblk), m_w)]               # D
    args = [xc, xz, xdb, dp["w_dtproj"], dp["b_dtproj"], dp["A"], dp["D"]]
    if acc is not None:
        in_specs.append(pl.BlockSpec((None, tc, dblk), m_u))
        args.append(acc)
    return pl.pallas_call(
        functools.partial(_scan_kernel, reverse=reverse,
                          accumulate=acc is not None,
                          r=r, s=s, g_steps=g_steps, bf16_exp=BF16_EXP),
        out_shape=jax.ShapeDtypeStruct((bsz, t, din), F32),
        grid=(nd, bsz, nc),
        in_specs=in_specs,
        out_specs=pl.BlockSpec((None, tc, dblk), m_u),
        scratch_shapes=[pltpu.VMEM((tc, dblk), F32),            # dt
                        pltpu.VMEM((tc, dblk), F32),            # dt*u
                        pltpu.VMEM((g_steps * s, dblk), F32),   # per-group h history
                        pltpu.VMEM((s, dblk), F32)],            # h carry across chunks
        compiler_params=_cparams(("parallel", "parallel", "arbitrary")),
    )(*args)


# ----------------------------- Mamba blocks -----------------------------

def bimamba_block(x, p, *, tc):
    """BiMamba ('v2'): shared in/out proj, separate fwd/bwd SSM branches."""
    b, t, d = x.shape
    bt = b * t
    din = p["d_inner"]
    dblk = 256 if din % 256 == 0 else din
    # shared input projection -> packed [x_branch ; z_gate]; halves are read
    # straight from this array by the downstream kernels (no explicit split).
    xz = linear(x.reshape(bt, d), p["w_in"]).reshape(b, t, 2 * din)

    def run_direction(dp, reverse, acc):
        xc = dwconv_silu(xz, dp["w_dwconv"], dp["b_dwconv"],
                         d_inner=din, reverse=reverse, tc=tc, dblk=dblk)
        xdb = linear(xc.reshape(bt, din), dp["w_xproj"]).reshape(b, t, 128)
        return selective_scan(xc, xz, xdb, dp, acc,
                              reverse=reverse, tc=tc, dblk=dblk)

    y = run_direction(p["fwd"], False, None)
    y = run_direction(p["bwd"], True, y)        # fwd+bwd sum fused in-kernel
    return y


def mamba_encoder_layer(x, p, *, tc):
    """(MM)MambaEncoderLayer: out = x + LayerNorm(mamba(x)); out-proj fused with LN."""
    y = bimamba_block(x, p, tc=tc)
    return outproj_ln_residual(y, p["w_out"], x, p["ln_gamma"], p["ln_beta"])


# ----------------------------- parameters -----------------------------

def init_cnn_layer(key, cin, cout):
    k1, k2 = jax.random.split(key)
    return {
        "w_conv3": (jax.random.normal(k1, (3, cin, cout), F32) * 0.02).astype(MXU_DTYPE),
        # eval-mode BN folded (gamma=1, beta=0, mean=0, var=1, eps=1e-5)
        "bn_scale": jnp.full((1, cout), 1.0 / math.sqrt(1.0 + 1e-5), F32),
        "bn_bias": jnp.zeros((1, cout), F32),
        "w_skip": (jax.random.normal(k2, (cin, cout), F32) * 0.02).astype(MXU_DTYPE)
        if cin != cout else None,
    }


def init_mamba_dir(key, d_inner, d_state, dt_rank):
    ks = jax.random.split(key, 4)
    n_cols = dt_rank + 2 * d_state
    xproj = jax.random.normal(ks[1], (d_inner, n_cols), F32) * 0.02
    xproj = jnp.pad(xproj, ((0, 0), (0, 128 - n_cols))).astype(MXU_DTYPE)   # lane-dense
    wdt = jax.random.normal(ks[2], (dt_rank, d_inner), F32) * 0.02
    wdt = jnp.pad(wdt, ((0, 128 - dt_rank), (0, 0)))   # zero rows: B/C/pad cols ignored
    return {
        "dt_rank": dt_rank,
        "w_dwconv": jax.random.normal(ks[0], (4, d_inner), F32) * 0.1,
        "b_dwconv": jnp.zeros((1, d_inner), F32),
        "w_xproj": xproj,
        "w_dtproj": wdt,                                   # f32 (feeds exp on recurrence)
        "b_dtproj": jax.random.normal(ks[3], (1, d_inner), F32) * 0.02 - 2.0,
        # TODO(synk): mamba_ssm uses A = -exp(A_log); plain -arange init here.
        "A": -jnp.broadcast_to(
            jnp.arange(1, d_state + 1, dtype=F32)[:, None],
            (d_state, d_inner)).astype(F32),
        "D": jnp.ones((1, d_inner), F32),
    }


def init_mamba_layer(key, d_model, d_state=16, expand=2):
    d_inner = expand * d_model
    dt_rank = math.ceil(d_model / 16)
    ks = jax.random.split(key, 4)
    return {
        "d_inner": d_inner,
        "w_in": (jax.random.normal(ks[0], (d_model, 2 * d_inner), F32) * 0.02).astype(MXU_DTYPE),
        "w_out": (jax.random.normal(ks[1], (d_inner, d_model), F32) * 0.02).astype(MXU_DTYPE),
        "fwd": init_mamba_dir(ks[2], d_inner, d_state, dt_rank),
        "bwd": init_mamba_dir(ks[3], d_inner, d_state, dt_rank),
        "ln_gamma": jnp.ones((1, d_model), F32),
        "ln_beta": jnp.zeros((1, d_model), F32),
    }


def init_arabic_mamba(key, output_size):
    input_size = 86 * 2            # 172, fixed by the module
    mm_input = 128
    out_sizes = [256, 512, 512]
    n_classes = output_size + 2
    n_pad = ((n_classes + 127) // 128) * 128
    keys = jax.random.split(key, 16)
    params = {
        "w_input_proj": (jax.random.normal(keys[0], (input_size, mm_input), F32)
                         * 0.02).astype(MXU_DTYPE),
        "cossm": [],
        "enssm": [],
    }
    for i, cout in enumerate(out_sizes):
        cin = mm_input if i < 1 else out_sizes[i - 1]
        params["cossm"].append({
            "cnn": init_cnn_layer(keys[1 + 2 * i], cin, cout),
            "mamba": init_mamba_layer(keys[2 + 2 * i], cout),
        })
    params["enssm"].append({
        "cnn": init_cnn_layer(keys[8], out_sizes[-1], out_sizes[-1]),
        "mamba": init_mamba_layer(keys[9], out_sizes[-1]),
    })
    params["cls_w1"] = (jax.random.normal(keys[10], (out_sizes[-1], 1024), F32)
                        * 0.02).astype(MXU_DTYPE)
    params["cls_b1"] = jnp.zeros((1024,), F32)
    w2 = jax.random.normal(keys[11], (1024, n_classes), F32) * 0.02
    params["cls_w2"] = jnp.pad(w2, ((0, 0), (0, n_pad - n_classes))).astype(MXU_DTYPE)
    params["cls_b2"] = jnp.zeros((n_pad,), F32)
    return params


# ----------------------------- forward -----------------------------

def arabic_mamba_forward(params, x, n_classes):
    """x: (B, T, 172) -> logits: (B, T, n_classes), n_classes = output_size + 2."""
    b, t, _ = x.shape
    bt = b * t
    tc = _pick_time_chunk(t)
    # input_proj: Conv1d(172 -> 128, k=1, bias=False) == per-timestep matmul
    h = linear(x.reshape(bt, -1), params["w_input_proj"]).reshape(b, t, -1)
    # CoSSM (3 layers) then EnSSM (1 layer): CNN residual + Mamba residual
    for layer in params["cossm"] + params["enssm"]:
        h = cnn_encoder_layer(h, layer["cnn"])
        h = mamba_encoder_layer(h, layer["mamba"], tc=tc)
    # classifier applied per-timestep (the reference forward does NOT pool)
    z = linear(h.reshape(bt, -1), params["cls_w1"], params["cls_b1"], act="relu")
    logits = linear(z, params["cls_w2"], params["cls_b2"])[:, :n_classes]
    return logits.reshape(b, t, n_classes)


if __name__ == "__main__":
    key = jax.random.PRNGKey(0)
    kp, kx = jax.random.split(key)
    output_size = 10
    n_classes = output_size + 2
    params = init_arabic_mamba(kp, output_size)
    B, T = 2, 8
    x = jax.random.normal(kx, (B, T, 86 * 2), F32)
    logits = arabic_mamba_forward(params, x, n_classes)
    logits = jax.block_until_ready(logits)
    assert logits.shape == (B, T, n_classes), logits.shape
    assert bool(jnp.all(jnp.isfinite(logits)))
    print("KERNEL_OK")
</pallas_src>

<mosaic_0001>
module attributes {stable_mosaic.version = 11 : i64} {
  func.func @_linear_kernel(%arg0: i32, %arg1: i32, %arg2: memref<16x172xf32, #tpu.memory_space<vmem>>, %arg3: memref<172x128xbf16, #tpu.memory_space<vmem>>, %arg4: memref<16x128xf32, #tpu.memory_space<vmem>>) attributes {dimension_semantics = [#tpu.dimension_semantics<parallel>, #tpu.dimension_semantics<parallel>], iteration_bounds = array<i64: 1, 1>, scalar_prefetch = 0 : i64, scratch_operands = 0 : i64, tpu.core_type = #tpu.core_type<tc>, window_params = [{transform_indices = @transform_0, window_bounds = array<i64: 16, 172>}, {transform_indices = @transform_1, window_bounds = array<i64: 172, 128>}, {transform_indices = @transform_2, window_bounds = array<i64: 16, 128>}]} {
    %c0 = arith.constant 0 : index
    %c0_0 = arith.constant 0 : index
    %0 = vector.load %arg2[%c0, %c0_0] : memref<16x172xf32, #tpu.memory_space<vmem>>, vector<16x172xf32>
    %1 = arith.truncf %0 : vector<16x172xf32> to vector<16x172xbf16>
    %c0_1 = arith.constant 0 : index
    %c0_2 = arith.constant 0 : index
    %2 = vector.load %arg3[%c0_1, %c0_2] : memref<172x128xbf16, #tpu.memory_space<vmem>>, vector<172x128xbf16>
    %cst = arith.constant dense<0.000000e+00> : vector<16x128xf32>
    %3 = tpu.matmul %1, %2, %cst {dimension_numbers = #tpu.dot_dimension_numbers<[1], [0], [0], [1], [0, 0, 1, 1], [], []>} : vector<16x172xbf16>, vector<172x128xbf16>, vector<16x128xf32> -> vector<16x128xf32>
    %c0_3 = arith.constant 0 : index
    %c0_4 = arith.constant 0 : index
    %4 = vector.load %arg4[%c0_3, %c0_4] : memref<16x128xf32, #tpu.memory_space<vmem>>, vector<16x128xf32>
    tpu.vector_store %arg4[%c0_3, %c0_4], %3 {strides = array<i32>} : memref<16x128xf32, #tpu.memory_space<vmem>>, vector<16x128xf32>,
    return
  }
  func.func @transform_0(%arg0: i32, %arg1: i32) -> (i32, i32) {
    %c0_i32 = arith.constant 0 : i32
    %c0_i32_0 = arith.constant 0 : i32
    return %arg1, %c0_i32 : i32, i32
  }
  func.func @transform_1(%arg0: i32, %arg1: i32) -> (i32, i32) {
    %c0_i32 = arith.constant 0 : i32
    %c0_i32_0 = arith.constant 0 : i32
    return %c0_i32, %arg0 : i32, i32
  }
  func.func @transform_2(%arg0: i32, %arg1: i32) -> (i32, i32) {
    %c0_i32 = arith.constant 0 : i32
    return %arg1, %arg0 : i32, i32
  }
}

</mosaic_0001>

<bundles_post_ra>
// kernel: tpu_custom_call.1
= control target key start
LH: loop header
LB: loop body
LE: loop exit
PB: predicated region body
PF: predicated region fallthrough
CT: control target
= control target key end

     0   :  { %7 = vsyncpa [#allocation3], 0  ;;  %s369_s0 = inlined_call_operand.hbm [shape: f32[16,172], index: 0, kind: input, shape index: {}]   ;;  %s370_s1 = inlined_call_operand.hbm [shape: bf16[172,128], index: 1, kind: input, shape index: {}]   ;;  %s371_s2 = inlined_call_operand.hbm [shape: f32[16,128], index: 2, kind: output, shape index: {}]  }
   0x1   :  { %8 = vsyncpa [#allocation6], 0 }
   0x2   :  { %9 = vsyncpa [#allocation4], 0  ;;  %s308_s9 = smov [#allocation2]   ;;  %s236_s13 = scalar_lea.hbm %s369_s0, 512 }
   0x3   :  { %s15_s10 = sshll.u32 %s308_s9, 4  ;;  %p237_p0 = scmp.ne.s32.totalorder %s369_s0, %s236_s13  ;;  %s16_s10 = int_to_ptr.vmem [resolvable:$true] %s15_s10 }
   0x4   :  { %p240_p1 = scmp.lt.u32.totalorder %s236_s13, %s369_s0 }
   0x6   :  { %p242_p2 = pnand %p240_p1, %p237_p0 }
   0x8   :  { %245 = shalt.err (!%p242_p2)
}
   0x9   :  { %s246_s18 = scalar_lea.vmem %s16_s10, 512  ;;  %p251_p4 = scmp.lt.s32.totalorder %s16_s10, %s16_s10 }
   0xa   :  { %p247_p3 = scmp.ne.s32.totalorder %s16_s10, %s246_s18  ;;  %p252_p5 = scmp.lt.s32.totalorder %s246_s18, %s246_s18 }
   0xc   :  { %p253_p6 = por %p252_p5, %p251_p4 }
   0xe   :  { %p254_p7 = pnand %p253_p6, %p247_p3 }
  0x10   :  { %257 = shalt.err (!%p254_p7)
}
  0x11   :  { %s309_s19 = smov 256   ;;  %s310_s20 = smov 16  }
  0x12   :  { %21 = dma.hbm_to_vmem [thread:$0]  %s369_s0, 512, %s16_s10, [#allocation3], %s309_s19, %s309_s19, %s310_s20  }
  0x13   :  { %s311_s23 = smov [#allocation5]   ;;  %s258_s27 = scalar_lea.hbm %s370_s1, 1408 }
  0x14   :  { %s27_s24 = sshll.u32 %s311_s23, 4  ;;  %p259_p8 = scmp.ne.s32.totalorder %s370_s1, %s258_s27  ;;  %s28_s24 = int_to_ptr.vmem [resolvable:$true] %s27_s24 }
  0x15   :  { %p262_p9 = scmp.lt.u32.totalorder %s258_s27, %s370_s1 }
  0x17   :  { %p264_p10 = pnand %p262_p9, %p259_p8 }
  0x19   :  { %267 = shalt.err (!%p264_p10)
}
  0x1a   :  { %s268_s4 = scalar_lea.vmem %s28_s24, 1408  ;;  %p273_p12 = scmp.lt.s32.totalorder %s28_s24, %s28_s24 }
  0x1b   :  { %p269_p11 = scmp.ne.s32.totalorder %s28_s24, %s268_s4  ;;  %p274_p13 = scmp.lt.s32.totalorder %s268_s4, %s268_s4 }
  0x1d   :  { %p275_p0 = por %p274_p13, %p273_p12 }
  0x1f   :  { %p276_p1 = pnand %p275_p0, %p269_p11 }
  0x21   :  { %279 = shalt.err (!%p276_p1)
}
  0x22   :  { %s312_s0 = smov 64   ;;  %s313_s5 = smov 4  }
  0x23   :  { %33 = dma.hbm_to_vmem [thread:$0]  %s370_s1, 1408, %s28_s24, [#allocation6], %s312_s0, %s312_s0, %s313_s5  }
  0x24   :  { %302 = dma.done.wait [#allocation3], 512  }
  0x25   :  { %303 = vsyncadd [#allocation3], 4294966784 }
  0x26   :  { %304 = dma.done.wait [#allocation6], 1408  }
  0x27   :  { %305 = vsyncadd [#allocation6], 4294965888  ;;  %v314_v0 = vmov 0   ;;  %v225_v1 = vld [vmem:[#allocation5] sm:$0xff]   ;;  %v226_v2 = vld [vmem:[#allocation5 + $0x8] sm:$0xff]   ;;  %vm134_vm0 = vcmask 359424  }
  0x28   :  { %142 = vmatprep.subr.bf16.mxu0 %v314_v0  ;;  %v227_v3 = vld [vmem:[#allocation5 + $0x10] sm:$0xff]   ;;  %v228_v4 = vld [vmem:[#allocation5 + $0x18] sm:$0xff]   ;;  %v42_v5 = vld [vmem:[#allocation2 + $0x8] sm:$0xff]  ;;  %vm138_vm1 = vcmask 1045504   ;;  %s315_s1 = smov [#allocation7]  }
  0x29   :  { %143 = vmatpush1.bf16.msra.mxu0 %v225_v1  ;;  %v44_v6 = vld [vmem:[#allocation2 + $0x18] sm:$0xff]  ;;  %v229_v8 = vld [vmem:[#allocation5 + $0x20] sm:$0xff]   ;;  %v230_v9 = vld [vmem:[#allocation5 + $0x28] sm:$0xff]   ;;  %s190_s8 = sshll.u32 %s315_s1, 4  ;;  %s191_s8 = int_to_ptr.vmem [resolvable:$true] %s190_s8 }
  0x2a   :  { %144 = vmatprep.subr.bf16.mxu0 %v314_v0  ;;  %v46_v7 = vpack.c.bf16 %v44_v6, %v42_v5  ;;  %v231_v10 = vld [vmem:[#allocation5 + $0x30] sm:$0xff]   ;;  %v232_v11 = vld [vmem:[#allocation5 + $0x38] sm:$0xff]   ;;  %v233_v12 = vld [vmem:[#allocation5 + $0x40] sm:$0xff]   ;;  %s280_s9 = scalar_lea.vmem %s191_s8, 256  ;;  %p285_p3 = scmp.lt.s32.totalorder %s191_s8, %s191_s8 }
  0x2b   :  { %v234_v13 = vld [vmem:[#allocation5 + $0x48] sm:$0xff]   ;;  %v235_v14 = vld [vmem:[#allocation5 + $0x50] sm:$0x3f]   ;;  %v41_v15 = vld [vmem:[#allocation2] sm:$0xff]  ;;  %p281_p2 = scmp.ne.s32.totalorder %s191_s8, %s280_s9  ;;  %p286_p4 = scmp.lt.s32.totalorder %s280_s9, %s280_s9 }
  0x2c   :  { %214 = vmatprep.mubr.msk.bf16.mxu0 %vm134_vm0, %v46_v7  ;;  %v43_v16 = vld [vmem:[#allocation2 + $0x10] sm:$0xff]  ;;  %v140_v17 = vsel %vm138_vm1, %v235_v14, 0 }
  0x2d   :  { %145 = vmatpush1.bf16.msra.mxu0 %v226_v2  ;;  %v45_v18 = vpack.c.bf16 %v43_v16, %v41_v15  ;;  %p287_p5 = por %p286_p4, %p285_p3 }
  0x2e   :  { %146 = vmatprep.subr.bf16.mxu0 %v314_v0 }
  0x2f   :  { %p288_p6 = pnand %p287_p5, %p281_p2 }
  0x31   :  { %147 = vmatpush1.bf16.msra.mxu0 %v227_v3 }
  0x32   :  { %148 = vmatprep.subr.bf16.mxu0 %v314_v0 }
  0x35   :  { %149 = vmatpush1.bf16.msra.mxu0 %v228_v4 }
  0x36   :  { %150 = vmatprep.subr.bf16.mxu0 %v314_v0 }
  0x39   :  { %151 = vmatpush1.bf16.msra.mxu0 %v229_v8 }
  0x3a   :  { %152 = vmatprep.subr.bf16.mxu0 %v314_v0 }
  0x3d   :  { %153 = vmatpush1.bf16.msra.mxu0 %v230_v9 }
  0x3e   :  { %154 = vmatprep.subr.bf16.mxu0 %v314_v0 }
  0x41   :  { %155 = vmatpush1.bf16.msra.mxu0 %v231_v10 }
  0x42   :  { %156 = vmatprep.subr.bf16.mxu0 %v314_v0 }
  0x45   :  { %157 = vmatpush1.bf16.msra.mxu0 %v232_v11 }
  0x46   :  { %158 = vmatprep.subr.bf16.mxu0 %v314_v0 }
  0x49   :  { %159 = vmatpush1.bf16.msra.mxu0 %v233_v12 }
  0x4a   :  { %160 = vmatprep.subr.bf16.mxu0 %v314_v0 }
  0x4d   :  { %161 = vmatpush1.bf16.msra.mxu0 %v234_v13 }
  0x4e   :  { %162 = vmatprep.subr.bf16.mxu0 %v314_v0 }
  0x51   :  { %163 = vmatpush1.bf16.msra.mxu0 %v140_v17 }
  0x54   :  { %175 = vmatmul.mubr.bf16.vlgmr.msra.gmra.mrb[0].mxu0 %v45_v18 }
 0x127   :  { %v176_v19 = vpop.f32.mrb[0].mxu0 }
 0x128   :  { %183 = vst [vmem:[#allocation7] sm:$0xff] %v176_v19  ;;  %v178_v20 = vpop.f32.mrb[1].mxu0 }
 0x129   :  { %v179_v21 = vpop.f32.mrb[2].mxu0 }
 0x12a   :  { %184 = vst [vmem:[#allocation7 + $0x8] sm:$0xff] %v179_v21  ;;  %v181_v22 = vpop.f32.mrb[3].mxu0 }
 0x12b   :  { %291 = shalt.err (!%p288_p6)
}
 0x12c   :  { %s292_s12 = scalar_lea.hbm %s371_s2, 256 }
 0x12d   :  { %p293_p7 = scmp.ne.s32.totalorder %s371_s2, %s292_s12  ;;  %p296_p8 = scmp.lt.u32.totalorder %s292_s12, %s371_s2 }
 0x12f   :  { %p298_p9 = pnand %p296_p8, %p293_p7 }
 0x131   :  { %301 = shalt.err (!%p298_p9)
}
 0x132   :  { %s316_s17 = smov 128   ;;  %s317_s18 = smov 8  }
 0x133   :  { %196 = dma.vmem_to_hbm [thread:$0]  %s191_s8, 256, %s371_s2, [#allocation4], %s316_s17, %s316_s17, %s317_s18  }
 0x134   :  { %306 = dma.done.wait [#allocation4], 256  }
 0x135   :  { %307 = vsyncadd [#allocation4], 4294967040 }
 0x136   :  { %200 = vsyncpa [#allocation3], 1 }
 0x137   :  { %201 = vsyncpa [#allocation6], 1 }
 0x138   :  { %202 = vsyncpa [#allocation4], 1 }

</bundles_post_ra>
